<compile_context>
chip_gen: v7x
topology: tpu7x:2x2x1
jax: 0.10.0
libtpu: 0.0.40
codegen_flags: <defaults>
</compile_context>

<pallas_src>
import functools

import jax
import jax.numpy as jnp
from jax.experimental import pallas as pl
from jax.experimental.pallas import tpu as pltpu


def _cdiv(a: int, b: int) -> int:
    return (a + b - 1) // b


def _round_up(x: int, m: int) -> int:
    return _cdiv(x, m) * m


def _pad_dim(d: int) -> int:
    # Lane (feature) dims: at least 128; 256-aligned when wider than one 128-lane
    # tile so the 2x256^2 MXUs on v6e/v7x get full-width passes.
    return 128 if d <= 128 else _round_up(d, 256)


def _pick_tile(dim: int, cap: int = 512) -> int:
    # Largest multiple of 128 that divides `dim` (dim is already 128-aligned) and
    # is <= cap.
    if dim <= cap:
        return dim
    for t in range(cap - cap % 128, 127, -128):
        if dim % t == 0:
            return t
    return 128


# ---------------------------------------------------------------------------------
# Kernels
# ---------------------------------------------------------------------------------
def _mlp_fused_kernel(*refs, num_layers: int, mxu_dtype):
    """refs = (x_ref, w0, b0, ..., w_{L-1}, b_{L-1}, o_ref). Whole MLP on one batch tile."""
    x_ref = refs[0]
    o_ref = refs[1 + 2 * num_layers]

    h = x_ref[...].astype(mxu_dtype)                      # (tb, in_pad) -> MXU dtype
    for i in range(num_layers):
        w_ref = refs[1 + 2 * i]
        b_ref = refs[2 + 2 * i]
        acc = jnp.dot(h, w_ref[...], preferred_element_type=jnp.float32)   # MXU, f32 acc
        acc = acc + b_ref[...]                            # f32 epilogue (bias is f32)
        if i < num_layers - 1:
            h = jnp.maximum(acc, 0.0).astype(mxu_dtype)   # ReLU, back to MXU dtype
        else:
            h = acc
    o_ref[...] = h.astype(o_ref.dtype)


def _linear_layer_kernel(x_ref, w_ref, b_ref, o_ref, acc_ref, *, apply_relu: bool):
    """Streamed fallback: one Linear (+ optional ReLU) with a K-reduction grid axis."""
    k = pl.program_id(2)

    @pl.when(k == 0)
    def _():
        acc_ref[...] = jnp.zeros_like(acc_ref)

    acc_ref[...] += jnp.dot(x_ref[...].astype(w_ref.dtype), w_ref[...],
                            preferred_element_type=jnp.float32)

    @pl.when(k == pl.num_programs(2) - 1)
    def _():
        acc = acc_ref[...] + b_ref[...]
        if apply_relu:
            acc = jnp.maximum(acc, 0.0)
        o_ref[...] = acc.astype(o_ref.dtype)


# ---------------------------------------------------------------------------------
# Wrappers
# ---------------------------------------------------------------------------------
def _forward_fused(xp, ws, bs, batch, batch_pad, tb, pdims, dims, mxu_dtype, vmem_limit):
    num_layers = len(ws)
    out_dtype = xp.dtype

    in_specs = [pl.BlockSpec((tb, pdims[0]), lambda i: (i, 0))]          # x: tiled over batch
    for li in range(num_layers):
        # Constant index_map + single buffer: weights/biases stay VMEM-resident
        # across batch tiles without a useless second pipeline buffer.
        in_specs.append(pl.BlockSpec((pdims[li], pdims[li + 1]), lambda i: (0, 0),
                                     pipeline_mode=pl.Buffered(1)))
        in_specs.append(pl.BlockSpec((1, pdims[li + 1]), lambda i: (0, 0),
                                     pipeline_mode=pl.Buffered(1)))
    out_specs = pl.BlockSpec((tb, pdims[-1]), lambda i: (i, 0))          # lane-dense output

    flops = int(sum(2 * batch_pad * pdims[i] * pdims[i + 1] for i in range(num_layers)))
    bytes_accessed = int(
        xp.size * xp.dtype.itemsize
        + sum(int(w.size) * w.dtype.itemsize for w in ws)
        + sum(int(b.size) * b.dtype.itemsize for b in bs)
        + batch_pad * pdims[-1] * jnp.dtype(out_dtype).itemsize)

    flat_params = [t for pair in zip(ws, bs) for t in pair]
    out_padded = pl.pallas_call(
        functools.partial(_mlp_fused_kernel, num_layers=num_layers, mxu_dtype=mxu_dtype),
        out_shape=jax.ShapeDtypeStruct((batch_pad, pdims[-1]), out_dtype),
        grid=(batch_pad // tb,),
        in_specs=in_specs,
        out_specs=out_specs,
        compiler_params=pltpu.CompilerParams(
            dimension_semantics=("parallel",),
            vmem_limit_bytes=int(vmem_limit)),
        cost_estimate=pl.CostEstimate(flops=flops, transcendentals=0,
                                      bytes_accessed=bytes_accessed),
    )(xp, *flat_params)
    return out_padded[:batch, :dims[-1]]


def _forward_streamed(xp, ws, bs, batch, batch_pad, tb, pdims, dims, mxu_dtype):
    # Weights too large for whole-weight VMEM residency (notably v7x's 64 MiB):
    # run each layer as a K/N-tiled matmul; the BlockSpec pipeline streams weight
    # tiles from HBM overlapped with MXU compute, f32 accumulator lives in VMEM.
    num_layers = len(ws)
    mxu_isz = jnp.dtype(mxu_dtype).itemsize
    h = xp
    for li in range(num_layers):
        K, N = pdims[li], pdims[li + 1]
        tk = _pick_tile(K)
        tn = _pick_tile(N)
        last = li == num_layers - 1
        out_dtype = xp.dtype if last else mxu_dtype       # inter-layer acts stay in MXU dtype
        h_isz = jnp.dtype(h.dtype).itemsize
        need = int(2 * (tb * tk * h_isz + tk * tn * mxu_isz + tn * 4)
                   + 2 * tb * tn * jnp.dtype(out_dtype).itemsize
                   + tb * tn * 4)
        h = pl.pallas_call(
            functools.partial(_linear_layer_kernel, apply_relu=not last),
            out_shape=jax.ShapeDtypeStruct((batch_pad, N), out_dtype),
            grid=(batch_pad // tb, N // tn, K // tk),
            in_specs=[pl.BlockSpec((tb, tk), lambda i, j, k: (i, k)),
                      pl.BlockSpec((tk, tn), lambda i, j, k: (k, j)),
                      pl.BlockSpec((1, tn), lambda i, j, k: (0, j))],
            out_specs=pl.BlockSpec((tb, tn), lambda i, j, k: (i, j)),
            scratch_shapes=[pltpu.VMEM((tb, tn), jnp.float32)],
            compiler_params=pltpu.CompilerParams(
                dimension_semantics=("parallel", "parallel", "arbitrary"),
                vmem_limit_bytes=int(need * 2) + (8 << 20)),
        )(h, ws[li], bs[li])
    return h[:batch, :dims[-1]]


def feed_forward_nn(x, params, *, tile_b: int = 256, mxu_dtype=jnp.bfloat16,
                    vmem_budget_bytes=None):
    """Fused forward pass: ReLU after every layer except the output layer.

    params: list of (W, b) with W (in_features, out_features), b (out_features,) or
    (1, out_features)  [y = x @ W + b, i.e. PyTorch's x @ W_pt.T + b].
    """
    batch, n_features = x.shape
    num_layers = len(params)
    params = [(w, jnp.asarray(b).reshape(1, -1)) for (w, b) in params]
    assert params[0][0].shape[0] == n_features

    dims = [n_features] + [w.shape[1] for (w, _) in params]
    pdims = [_pad_dim(d) for d in dims]

    # Balanced batch tiling; >= 2 tiles when the batch allows so the "parallel" grid
    # axis actually feeds both TensorCores on v7x.
    n_tiles = max(_cdiv(batch, tile_b), 2 if _round_up(batch, 8) >= 16 else 1)
    tb = _round_up(_cdiv(batch, n_tiles), 8)
    n_tiles = _cdiv(batch, tb)
    batch_pad = n_tiles * tb

    # Zero-pad (mathematically inert; sliced off at the end).  Weights cast to the
    # MXU dtype (bf16 by default), biases kept in f32 for the f32 epilogue.
    xp = jnp.pad(x, ((0, batch_pad - batch), (0, pdims[0] - dims[0])))
    ws, bs = [], []
    for i, (w, b) in enumerate(params):
        ws.append(jnp.pad(w.astype(mxu_dtype),
                          ((0, pdims[i] - w.shape[0]), (0, pdims[i + 1] - w.shape[1]))))
        bs.append(jnp.pad(b.astype(jnp.float32), ((0, 0), (0, pdims[i + 1] - b.shape[1]))))

    # Per-generation VMEM budget (physical VMEM minus headroom for Mosaic scratch).
    if vmem_budget_bytes is None:
        try:
            phys = getattr(pltpu.get_tpu_info(), "vmem_capacity_bytes", 64 << 20)
        except Exception:
            phys = 64 << 20                               # v7x worst case
        vmem_budget_bytes = int(phys * 3 // 4)

    x_isz = jnp.dtype(x.dtype).itemsize
    mxu_isz = jnp.dtype(mxu_dtype).itemsize
    resident_bytes = (sum(int(w.size) for w in ws) * mxu_isz
                      + sum(int(b.size) for b in bs) * 4)
    fused_need = int(
        resident_bytes                                    # 1x (Buffered(1)) weights + biases
        + 2 * tb * pdims[0] * x_isz                       # double-buffered x tile
        + 2 * tb * pdims[-1] * x_isz                      # double-buffered out tile
        + 4 * tb * max(pdims) * 4)                        # live f32 acc / h / vreg slack
    fused_need = int(fused_need * 5 // 4) + (4 << 20)

    if fused_need <= vmem_budget_bytes:
        vmem_limit = min(int(vmem_budget_bytes), max(fused_need, 32 << 20))
        return _forward_fused(xp, ws, bs, batch, batch_pad, tb, pdims, dims,
                              mxu_dtype, vmem_limit)
    return _forward_streamed(xp, ws, bs, batch, batch_pad, tb, pdims, dims, mxu_dtype)


# ---------------------------------------------------------------------------------
# Reference + test
# ---------------------------------------------------------------------------------
def init_params(key, n_features, hidden_size, layers, n_classes, dtype=jnp.float32):
    """PyTorch-style shapes: W stored transposed as (in, out), b as (out,)."""
    dims = [n_features] + [hidden_size] * layers + [n_classes]
    params = []
    for i in range(len(dims) - 1):
        key, kw, kb = jax.random.split(key, 3)
        fan_in, fan_out = dims[i], dims[i + 1]
        scale = 1.0 / jnp.sqrt(jnp.asarray(fan_in, dtype))
        w = jax.random.uniform(kw, (fan_in, fan_out), dtype, -scale, scale)
        b = jax.random.uniform(kb, (fan_out,), dtype, -scale, scale)
        params.append((w, b))
    return params


def feed_forward_nn_ref(x, params, mxu_dtype=None):
    n = len(params)
    h = x
    for i, (w, b) in enumerate(params):
        b2 = jnp.asarray(b).reshape(1, -1).astype(jnp.float32)
        if mxu_dtype is not None:
            acc = jnp.dot(h.astype(mxu_dtype), w.astype(mxu_dtype),
                          preferred_element_type=jnp.float32) + b2
        else:
            acc = jnp.dot(h.astype(jnp.float32), w.astype(jnp.float32),
                          preferred_element_type=jnp.float32) + b2
        h = jnp.maximum(acc, 0.0) if i < n - 1 else acc
    return h.astype(x.dtype)


if __name__ == "__main__":
    n_classes = 2
    n_features = 16
    hidden_size = 32
    layers = 3
    batch = 2

    key = jax.random.PRNGKey(0)
    key, kx = jax.random.split(key)
    x = jax.random.normal(kx, (batch, n_features), jnp.float32)
    params = init_params(key, n_features, hidden_size, layers, n_classes)

    ref_f32 = feed_forward_nn_ref(x, params)
    ref_bf16 = feed_forward_nn_ref(x, params, mxu_dtype=jnp.bfloat16)

    # 1) Default fused path: resident weights, bf16 MXU, f32 accumulate/epilogue.
    out = jax.block_until_ready(jax.jit(feed_forward_nn)(x, params))
    assert out.shape == (batch, n_classes), out.shape
    assert jnp.allclose(out, ref_bf16, atol=2e-2, rtol=2e-2), (out, ref_bf16)
    assert jnp.allclose(out, ref_f32, atol=5e-2, rtol=5e-2), (out, ref_f32)

    # 2) Exact f32 MXU path matches the f32 reference tightly.
    out_f32 = jax.block_until_ready(
        jax.jit(functools.partial(feed_forward_nn, mxu_dtype=jnp.float32))(x, params))
    assert jnp.allclose(out_f32, ref_f32, atol=1e-5, rtol=1e-5), (out_f32, ref_f32)

    # 3) Force the streamed-weight fallback (path used when weights exceed the
    #    per-generation VMEM budget, e.g. very wide MLPs on v7x).
    out_stream = jax.block_until_ready(
        jax.jit(functools.partial(feed_forward_nn, vmem_budget_bytes=1))(x, params))
    assert out_stream.shape == (batch, n_classes), out_stream.shape
    assert jnp.allclose(out_stream, ref_bf16, atol=2e-2, rtol=2e-2), (out_stream, ref_bf16)

    print("KERNEL_OK")
</pallas_src>

<mosaic_0001>
module attributes {stable_mosaic.version = 11 : i64} {
  func.func @_mlp_fused_kernel(%arg0: i32, %arg1: memref<8x128xf32, #tpu.memory_space<vmem>>, %arg2: memref<128x128xbf16, #tpu.memory_space<vmem>>, %arg3: memref<1x128xf32, #tpu.memory_space<vmem>>, %arg4: memref<128x128xbf16, #tpu.memory_space<vmem>>, %arg5: memref<1x128xf32, #tpu.memory_space<vmem>>, %arg6: memref<128x128xbf16, #tpu.memory_space<vmem>>, %arg7: memref<1x128xf32, #tpu.memory_space<vmem>>, %arg8: memref<128x128xbf16, #tpu.memory_space<vmem>>, %arg9: memref<1x128xf32, #tpu.memory_space<vmem>>, %arg10: memref<8x128xf32, #tpu.memory_space<vmem>>) attributes {dimension_semantics = [#tpu.dimension_semantics<parallel>], iteration_bounds = array<i64: 1>, scalar_prefetch = 0 : i64, scratch_operands = 0 : i64, tpu.core_type = #tpu.core_type<tc>, window_params = [{transform_indices = @transform_0, window_bounds = array<i64: 8, 128>}, {pipeline_mode = #tpu.pipeline_mode<synchronous>, transform_indices = @transform_1, window_bounds = array<i64: 128, 128>}, {pipeline_mode = #tpu.pipeline_mode<synchronous>, transform_indices = @transform_2, window_bounds = array<i64: 1, 128>}, {pipeline_mode = #tpu.pipeline_mode<synchronous>, transform_indices = @transform_3, window_bounds = array<i64: 128, 128>}, {pipeline_mode = #tpu.pipeline_mode<synchronous>, transform_indices = @transform_4, window_bounds = array<i64: 1, 128>}, {pipeline_mode = #tpu.pipeline_mode<synchronous>, transform_indices = @transform_5, window_bounds = array<i64: 128, 128>}, {pipeline_mode = #tpu.pipeline_mode<synchronous>, transform_indices = @transform_6, window_bounds = array<i64: 1, 128>}, {pipeline_mode = #tpu.pipeline_mode<synchronous>, transform_indices = @transform_7, window_bounds = array<i64: 128, 128>}, {pipeline_mode = #tpu.pipeline_mode<synchronous>, transform_indices = @transform_8, window_bounds = array<i64: 1, 128>}, {transform_indices = @transform_9, window_bounds = array<i64: 8, 128>}]} {
    %c0 = arith.constant 0 : index
    %c0_0 = arith.constant 0 : index
    %0 = vector.load %arg1[%c0, %c0_0] : memref<8x128xf32, #tpu.memory_space<vmem>>, vector<8x128xf32>
    %1 = arith.truncf %0 : vector<8x128xf32> to vector<8x128xbf16>
    %c0_1 = arith.constant 0 : index
    %c0_2 = arith.constant 0 : index
    %2 = vector.load %arg2[%c0_1, %c0_2] : memref<128x128xbf16, #tpu.memory_space<vmem>>, vector<128x128xbf16>
    %cst = arith.constant dense<0.000000e+00> : vector<8x128xf32>
    %3 = tpu.matmul %1, %2, %cst {dimension_numbers = #tpu.dot_dimension_numbers<[1], [0], [0], [1], [0, 0, 1, 1], [], []>} : vector<8x128xbf16>, vector<128x128xbf16>, vector<8x128xf32> -> vector<8x128xf32>
    %c0_3 = arith.constant 0 : index
    %c0_4 = arith.constant 0 : index
    %4 = vector.load %arg3[%c0_3, %c0_4] : memref<1x128xf32, #tpu.memory_space<vmem>>, vector<1x128xf32>
    %5 = vector.broadcast %4 : vector<1x128xf32> to vector<8x128xf32>
    %6 = arith.addf %3, %5 : vector<8x128xf32>
    %cst_5 = arith.constant 0.000000e+00 : f32
    %7 = vector.broadcast %cst_5 : f32 to vector<8x128xf32>
    %8 = arith.maximumf %6, %7 : vector<8x128xf32>
    %9 = arith.truncf %8 : vector<8x128xf32> to vector<8x128xbf16>
    %c0_6 = arith.constant 0 : index
    %c0_7 = arith.constant 0 : index
    %10 = vector.load %arg4[%c0_6, %c0_7] : memref<128x128xbf16, #tpu.memory_space<vmem>>, vector<128x128xbf16>
    %cst_8 = arith.constant dense<0.000000e+00> : vector<8x128xf32>
    %11 = tpu.matmul %9, %10, %cst_8 {dimension_numbers = #tpu.dot_dimension_numbers<[1], [0], [0], [1], [0, 0, 1, 1], [], []>} : vector<8x128xbf16>, vector<128x128xbf16>, vector<8x128xf32> -> vector<8x128xf32>
    %c0_9 = arith.constant 0 : index
    %c0_10 = arith.constant 0 : index
    %12 = vector.load %arg5[%c0_9, %c0_10] : memref<1x128xf32, #tpu.memory_space<vmem>>, vector<1x128xf32>
    %13 = vector.broadcast %12 : vector<1x128xf32> to vector<8x128xf32>
    %14 = arith.addf %11, %13 : vector<8x128xf32>
    %cst_11 = arith.constant 0.000000e+00 : f32
    %15 = vector.broadcast %cst_11 : f32 to vector<8x128xf32>
    %16 = arith.maximumf %14, %15 : vector<8x128xf32>
    %17 = arith.truncf %16 : vector<8x128xf32> to vector<8x128xbf16>
    %c0_12 = arith.constant 0 : index
    %c0_13 = arith.constant 0 : index
    %18 = vector.load %arg6[%c0_12, %c0_13] : memref<128x128xbf16, #tpu.memory_space<vmem>>, vector<128x128xbf16>
    %cst_14 = arith.constant dense<0.000000e+00> : vector<8x128xf32>
    %19 = tpu.matmul %17, %18, %cst_14 {dimension_numbers = #tpu.dot_dimension_numbers<[1], [0], [0], [1], [0, 0, 1, 1], [], []>} : vector<8x128xbf16>, vector<128x128xbf16>, vector<8x128xf32> -> vector<8x128xf32>
    %c0_15 = arith.constant 0 : index
    %c0_16 = arith.constant 0 : index
    %20 = vector.load %arg7[%c0_15, %c0_16] : memref<1x128xf32, #tpu.memory_space<vmem>>, vector<1x128xf32>
    %21 = vector.broadcast %20 : vector<1x128xf32> to vector<8x128xf32>
    %22 = arith.addf %19, %21 : vector<8x128xf32>
    %cst_17 = arith.constant 0.000000e+00 : f32
    %23 = vector.broadcast %cst_17 : f32 to vector<8x128xf32>
    %24 = arith.maximumf %22, %23 : vector<8x128xf32>
    %25 = arith.truncf %24 : vector<8x128xf32> to vector<8x128xbf16>
    %c0_18 = arith.constant 0 : index
    %c0_19 = arith.constant 0 : index
    %26 = vector.load %arg8[%c0_18, %c0_19] : memref<128x128xbf16, #tpu.memory_space<vmem>>, vector<128x128xbf16>
    %cst_20 = arith.constant dense<0.000000e+00> : vector<8x128xf32>
    %27 = tpu.matmul %25, %26, %cst_20 {dimension_numbers = #tpu.dot_dimension_numbers<[1], [0], [0], [1], [0, 0, 1, 1], [], []>} : vector<8x128xbf16>, vector<128x128xbf16>, vector<8x128xf32> -> vector<8x128xf32>
    %c0_21 = arith.constant 0 : index
    %c0_22 = arith.constant 0 : index
    %28 = vector.load %arg9[%c0_21, %c0_22] : memref<1x128xf32, #tpu.memory_space<vmem>>, vector<1x128xf32>
    %29 = vector.broadcast %28 : vector<1x128xf32> to vector<8x128xf32>
    %30 = arith.addf %27, %29 : vector<8x128xf32>
    %c0_23 = arith.constant 0 : index
    %c0_24 = arith.constant 0 : index
    %31 = vector.load %arg10[%c0_23, %c0_24] : memref<8x128xf32, #tpu.memory_space<vmem>>, vector<8x128xf32>
    tpu.vector_store %arg10[%c0_23, %c0_24], %30 {strides = array<i32>} : memref<8x128xf32, #tpu.memory_space<vmem>>, vector<8x128xf32>,
    return
  }
  func.func @transform_0(%arg0: i32) -> (i32, i32) {
    %c0_i32 = arith.constant 0 : i32
    %c0_i32_0 = arith.constant 0 : i32
    return %arg0, %c0_i32 : i32, i32
  }
  func.func @transform_1(%arg0: i32) -> (i32, i32) {
    %c0_i32 = arith.constant 0 : i32
    %c0_i32_0 = arith.constant 0 : i32
    %c0_i32_1 = arith.constant 0 : i32
    return %c0_i32, %c0_i32_0 : i32, i32
  }
  func.func @transform_2(%arg0: i32) -> (i32, i32) {
    %c0_i32 = arith.constant 0 : i32
    %c0_i32_0 = arith.constant 0 : i32
    %c0_i32_1 = arith.constant 0 : i32
    return %c0_i32, %c0_i32_0 : i32, i32
  }
  func.func @transform_3(%arg0: i32) -> (i32, i32) {
    %c0_i32 = arith.constant 0 : i32
    %c0_i32_0 = arith.constant 0 : i32
    %c0_i32_1 = arith.constant 0 : i32
    return %c0_i32, %c0_i32_0 : i32, i32
  }
  func.func @transform_4(%arg0: i32) -> (i32, i32) {
    %c0_i32 = arith.constant 0 : i32
    %c0_i32_0 = arith.constant 0 : i32
    %c0_i32_1 = arith.constant 0 : i32
    return %c0_i32, %c0_i32_0 : i32, i32
  }
  func.func @transform_5(%arg0: i32) -> (i32, i32) {
    %c0_i32 = arith.constant 0 : i32
    %c0_i32_0 = arith.constant 0 : i32
    %c0_i32_1 = arith.constant 0 : i32
    return %c0_i32, %c0_i32_0 : i32, i32
  }
  func.func @transform_6(%arg0: i32) -> (i32, i32) {
    %c0_i32 = arith.constant 0 : i32
    %c0_i32_0 = arith.constant 0 : i32
    %c0_i32_1 = arith.constant 0 : i32
    return %c0_i32, %c0_i32_0 : i32, i32
  }
  func.func @transform_7(%arg0: i32) -> (i32, i32) {
    %c0_i32 = arith.constant 0 : i32
    %c0_i32_0 = arith.constant 0 : i32
    %c0_i32_1 = arith.constant 0 : i32
    return %c0_i32, %c0_i32_0 : i32, i32
  }
  func.func @transform_8(%arg0: i32) -> (i32, i32) {
    %c0_i32 = arith.constant 0 : i32
    %c0_i32_0 = arith.constant 0 : i32
    %c0_i32_1 = arith.constant 0 : i32
    return %c0_i32, %c0_i32_0 : i32, i32
  }
  func.func @transform_9(%arg0: i32) -> (i32, i32) {
    %c0_i32 = arith.constant 0 : i32
    %c0_i32_0 = arith.constant 0 : i32
    return %arg0, %c0_i32 : i32, i32
  }
}

</mosaic_0001>

<bundles_post_ra>
// kernel: feed_forward_nn.1
= control target key start
LH: loop header
LB: loop body
LE: loop exit
PB: predicated region body
PF: predicated region fallthrough
CT: control target
= control target key end

     0   :  { %v676_v0 = vmov 0.0   ;;  %vm677_vm0 = vmmov 0   ;;  %s882_s1 = inlined_call_operand.vmem [shape: bf16[128,128], index: 1, kind: input, shape index: {}]   ;;  %s883_s3 = inlined_call_operand.vmem [shape: bf16[128,128], index: 3, kind: input, shape index: {}]   ;;  %s884_s0 = inlined_call_operand.vmem [shape: f32[8,128], index: 0, kind: input, shape index: {}]   ;;  %s885_s5 = inlined_call_operand.vmem [shape: bf16[128,128], index: 5, kind: input, shape index: {}]   ;;  %s886_s2 = inlined_call_operand.vmem [shape: f32[1,128], index: 2, kind: input, shape index: {}]   ;;  %s887_s7 = inlined_call_operand.vmem [shape: bf16[128,128], index: 7, kind: input, shape index: {}]   ;;  %s888_s4 = inlined_call_operand.vmem [shape: f32[1,128], index: 4, kind: input, shape index: {}]   ;;  %s889_s6 = inlined_call_operand.vmem [shape: f32[1,128], index: 6, kind: input, shape index: {}]   ;;  %s890_s8 = inlined_call_operand.vmem [shape: f32[1,128], index: 8, kind: input, shape index: {}]   ;;  %s891_s9 = inlined_call_operand.vmem [shape: f32[8,128], index: 9, kind: output, shape index: {}]  }
   0x1   :  { %562 = vmatprep.subr.bf16.mxu0 %v676_v0  ;;  %v644_v1 = vld [vmem:[%s882_s1] sm:$0xff]   ;;  %578 = vmatprep.mubr.msk.bf16.mxu0 %vm677_vm0, %v676_v0  ;;  %v645_v2 = vld [vmem:[%s882_s1 + $0x8] sm:$0xff]   ;;  %v646_v3 = vld [vmem:[%s882_s1 + $0x10] sm:$0xff]  }
   0x2   :  { %582 = vmatprep.subr.bf16.mxu1 %v676_v0  ;;  %598 = vmatprep.mubr.msk.bf16.mxu1 %vm677_vm0, %v676_v0  ;;  %v652_v4 = vld [vmem:[%s883_s3] sm:$0xff]   ;;  %v647_v5 = vld [vmem:[%s882_s1 + $0x18] sm:$0xff]   ;;  %v653_v6 = vld [vmem:[%s883_s3 + $0x8] sm:$0xff]  }
   0x3   :  { %563 = vmatpush3.bf16.msra.mxu0 %v644_v1  ;;  %583 = vmatpush3.bf16.msra.mxu1 %v652_v4  ;;  %v648_v7 = vld [vmem:[%s882_s1 + $0x20] sm:$0xff]   ;;  %v654_v8 = vld [vmem:[%s883_s3 + $0x10] sm:$0xff]   ;;  %v649_v9 = vld [vmem:[%s882_s1 + $0x28] sm:$0xff]  }
   0x4   :  { %564 = vmatprep.subr.bf16.mxu0 %v676_v0  ;;  %584 = vmatprep.subr.bf16.mxu1 %v676_v0  ;;  %v655_v10 = vld [vmem:[%s883_s3 + $0x18] sm:$0xff]   ;;  %v650_v11 = vld [vmem:[%s882_s1 + $0x30] sm:$0xff]   ;;  %v656_v12 = vld [vmem:[%s883_s3 + $0x20] sm:$0xff]  }
   0x5   :  { %v651_v13 = vld [vmem:[%s882_s1 + $0x38] sm:$0xff]   ;;  %v33_v14 = vld [vmem:[%s884_s0] sm:$0xff]  ;;  %v657_v15 = vld [vmem:[%s883_s3 + $0x28] sm:$0xff]  }
   0x6   :  { %v34_v16 = vpack.c.bf16 %v33_v14, %v33_v14  ;;  %v658_v17 = vld [vmem:[%s883_s3 + $0x30] sm:$0xff]   ;;  %v659_v18 = vld [vmem:[%s883_s3 + $0x38] sm:$0xff]   ;;  %v660_v19 = vld [vmem:[%s885_s5] sm:$0xff]  }
   0x7   :  { %565 = vmatpush3.bf16.msra.mxu0 %v645_v2  ;;  %585 = vmatpush3.bf16.msra.mxu1 %v653_v6  ;;  %v661_v20 = vld [vmem:[%s885_s5 + $0x8] sm:$0xff]   ;;  %v662_v21 = vld [vmem:[%s885_s5 + $0x10] sm:$0xff]   ;;  %v663_v22 = vld [vmem:[%s885_s5 + $0x18] sm:$0xff]  }
   0x8   :  { %566 = vmatprep.subr.bf16.mxu0 %v676_v0  ;;  %586 = vmatprep.subr.bf16.mxu1 %v676_v0  ;;  %v664_v23 = vld [vmem:[%s885_s5 + $0x20] sm:$0xff]   ;;  %v665_v24 = vld [vmem:[%s885_s5 + $0x28] sm:$0xff]   ;;  %v666_v33 = vld [vmem:[%s885_s5 + $0x30] sm:$0xff]  }
   0x9   :  { %v490_v25 = vld [vmem:[%s886_s2] ss:$0 sm:$0xff]  ;;  %v667_v34 = vld [vmem:[%s885_s5 + $0x38] sm:$0xff]   ;;  %v669_v36 = vld [vmem:[%s887_s7 + $0x8] sm:$0xff]  }
   0xa   :  { %v668_v35 = vld [vmem:[%s887_s7] sm:$0xff]   ;;  %v670_v37 = vld [vmem:[%s887_s7 + $0x10] sm:$0xff]   ;;  %v671_v38 = vld [vmem:[%s887_s7 + $0x18] sm:$0xff]  }
   0xb   :  { %567 = vmatpush3.bf16.msra.mxu0 %v646_v3  ;;  %587 = vmatpush3.bf16.msra.mxu1 %v654_v8  ;;  %v672_v39 = vld [vmem:[%s887_s7 + $0x20] sm:$0xff]   ;;  %v673_v40 = vld [vmem:[%s887_s7 + $0x28] sm:$0xff]   ;;  %v674_v49 = vld [vmem:[%s887_s7 + $0x30] sm:$0xff]  }
   0xc   :  { %568 = vmatprep.subr.bf16.mxu0 %v676_v0  ;;  %588 = vmatprep.subr.bf16.mxu1 %v676_v0  ;;  %v499_v41 = vld [vmem:[%s888_s4] ss:$0 sm:$0xff]  ;;  %v675_v50 = vld [vmem:[%s887_s7 + $0x38] sm:$0xff]  }
   0xd   :  { %v508_v51 = vld [vmem:[%s889_s6] ss:$0 sm:$0xff] }
   0xe   :  { %v517_v59 = vld [vmem:[%s890_s8] ss:$0 sm:$0xff] }
   0xf   :  { %569 = vmatpush3.bf16.msra.mxu0 %v647_v5  ;;  %589 = vmatpush3.bf16.msra.mxu1 %v655_v10 }
  0x10   :  { %570 = vmatprep.subr.bf16.mxu0 %v676_v0  ;;  %590 = vmatprep.subr.bf16.mxu1 %v676_v0 }
  0x13   :  { %571 = vmatpush3.bf16.msra.mxu0 %v648_v7  ;;  %591 = vmatpush3.bf16.msra.mxu1 %v656_v12 }
  0x14   :  { %572 = vmatprep.subr.bf16.mxu0 %v676_v0  ;;  %592 = vmatprep.subr.bf16.mxu1 %v676_v0 }
  0x17   :  { %573 = vmatpush3.bf16.msra.mxu0 %v649_v9  ;;  %593 = vmatpush3.bf16.msra.mxu1 %v657_v15 }
  0x18   :  { %574 = vmatprep.subr.bf16.mxu0 %v676_v0  ;;  %594 = vmatprep.subr.bf16.mxu1 %v676_v0 }
  0x1b   :  { %575 = vmatpush3.bf16.msra.mxu0 %v650_v11  ;;  %595 = vmatpush3.bf16.msra.mxu1 %v658_v17 }
  0x1c   :  { %576 = vmatprep.subr.bf16.mxu0 %v676_v0  ;;  %596 = vmatprep.subr.bf16.mxu1 %v676_v0 }
  0x1f   :  { %577 = vmatpush3.bf16.msra.mxu0 %v651_v13  ;;  %597 = vmatpush3.bf16.msra.mxu1 %v659_v18 }
  0x20   :  { %602 = vmatprep.subr.bf16.mxu0 %v676_v0  ;;  %622 = vmatprep.subr.bf16.mxu1 %v676_v0 }
  0x22   :  { %579 = vmatmul.mubr.bf16.vlgmr.msra.gmra.mrb[0].mxu0 %v34_v16 }
  0x23   :  { %618 = vmatprep.mubr.msk.bf16.mxu0 %vm677_vm0, %v676_v0  ;;  %603 = vmatpush3.bf16.msra.mxu0 %v660_v19 }
  0x24   :  { %604 = vmatprep.subr.bf16.mxu0 %v676_v0 }
  0x27   :  { %605 = vmatpush3.bf16.msra.mxu0 %v661_v20 }
  0x28   :  { %606 = vmatprep.subr.bf16.mxu0 %v676_v0 }
  0x2b   :  { %607 = vmatpush3.bf16.msra.mxu0 %v662_v21 }
  0x2c   :  { %608 = vmatprep.subr.bf16.mxu0 %v676_v0 }
  0x2f   :  { %609 = vmatpush3.bf16.msra.mxu0 %v663_v22 }
  0x30   :  { %610 = vmatprep.subr.bf16.mxu0 %v676_v0 }
  0x33   :  { %611 = vmatpush3.bf16.msra.mxu0 %v664_v23 }
  0x34   :  { %612 = vmatprep.subr.bf16.mxu0 %v676_v0 }
  0x37   :  { %613 = vmatpush3.bf16.msra.mxu0 %v665_v24 }
  0x38   :  { %614 = vmatprep.subr.bf16.mxu0 %v676_v0 }
  0x3b   :  { %615 = vmatpush3.bf16.msra.mxu0 %v666_v33 }
  0x3c   :  { %616 = vmatprep.subr.bf16.mxu0 %v676_v0 }
  0x3f   :  { %617 = vmatpush3.bf16.msra.mxu0 %v667_v34 }
  0xf5   :  { %v140_v26 = vpop.f32.mrb[0].mxu0 }
  0xf6   :  { %v141_v27 = vadd.f32 %v490_v25, %v140_v26  ;;  %v580_v28 = vpop.f32.mrb[1].mxu0 }
  0xf7   :  { %v143_v29 = vpop.f32.mrb[2].mxu0 }
  0xf8   :  { %v146_v30 = vmax.f32 %v141_v27, 0.0  ;;  %v581_v31 = vpop.f32.mrb[3].mxu0 }
  0xfa   :  { %v147_v32 = vpack.c.bf16 %v146_v30, %v146_v30 }
  0xfc   :  { %599 = vmatmul.mubr.bf16.vlgmr.msra.gmra.mrb[0].mxu1 %v147_v32 }
  0xfd   :  { %638 = vmatprep.mubr.msk.bf16.mxu1 %vm677_vm0, %v676_v0  ;;  %623 = vmatpush3.bf16.msra.mxu1 %v668_v35 }
  0xfe   :  { %624 = vmatprep.subr.bf16.mxu1 %v676_v0 }
 0x101   :  { %625 = vmatpush3.bf16.msra.mxu1 %v669_v36 }
 0x102   :  { %626 = vmatprep.subr.bf16.mxu1 %v676_v0 }
 0x105   :  { %627 = vmatpush3.bf16.msra.mxu1 %v670_v37 }
 0x106   :  { %628 = vmatprep.subr.bf16.mxu1 %v676_v0 }
 0x109   :  { %629 = vmatpush3.bf16.msra.mxu1 %v671_v38 }
 0x10a   :  { %630 = vmatprep.subr.bf16.mxu1 %v676_v0 }
 0x10d   :  { %631 = vmatpush3.bf16.msra.mxu1 %v672_v39 }
 0x10e   :  { %632 = vmatprep.subr.bf16.mxu1 %v676_v0 }
 0x111   :  { %633 = vmatpush3.bf16.msra.mxu1 %v673_v40 }
 0x112   :  { %634 = vmatprep.subr.bf16.mxu1 %v676_v0 }
 0x115   :  { %635 = vmatpush3.bf16.msra.mxu1 %v674_v49 }
 0x116   :  { %636 = vmatprep.subr.bf16.mxu1 %v676_v0 }
 0x119   :  { %637 = vmatpush3.bf16.msra.mxu1 %v675_v50 }
 0x1cf   :  { %v253_v42 = vpop.f32.mrb[0].mxu1 }
 0x1d0   :  { %v254_v43 = vadd.f32 %v499_v41, %v253_v42  ;;  %v600_v44 = vpop.f32.mrb[1].mxu1 }
 0x1d1   :  { %v256_v45 = vpop.f32.mrb[2].mxu1 }
 0x1d2   :  { %v259_v46 = vmax.f32 %v254_v43, 0.0  ;;  %v601_v47 = vpop.f32.mrb[3].mxu1 }
 0x1d4   :  { %v260_v48 = vpack.c.bf16 %v259_v46, %v259_v46 }
 0x1d6   :  { %619 = vmatmul.mubr.bf16.vlgmr.msra.gmra.mrb[4].mxu0 %v260_v48 }
 0x2a9   :  { %v366_v52 = vpop.f32.mrb[4].mxu0 }
 0x2aa   :  { %v367_v53 = vadd.f32 %v508_v51, %v366_v52  ;;  %v620_v54 = vpop.f32.mrb[5].mxu0 }
 0x2ab   :  { %v369_v55 = vpop.f32.mrb[6].mxu0 }
 0x2ac   :  { %v372_v56 = vmax.f32 %v367_v53, 0.0  ;;  %v621_v57 = vpop.f32.mrb[7].mxu0 }
 0x2ae   :  { %v373_v58 = vpack.c.bf16 %v372_v56, %v372_v56 }
 0x2b0   :  { %639 = vmatmul.mubr.bf16.vlgmr.msra.gmra.mrb[4].mxu1 %v373_v58 }
 0x383   :  { %v479_v60 = vpop.f32.mrb[4].mxu1 }
 0x384   :  { %v480_v61 = vadd.f32 %v517_v59, %v479_v60  ;;  %v640_v62 = vpop.f32.mrb[5].mxu1 }
 0x385   :  { %v482_v63 = vpop.f32.mrb[6].mxu1 }
 0x386   :  { %485 = vst [vmem:[%s891_s9] sm:$0xff] %v480_v61  ;;  %v641_v0 = vpop.f32.mrb[7].mxu1 }

</bundles_post_ra>
